<compile_context>
chip_gen: v7x
topology: tpu7x:2x2x1
jax: 0.10.0
libtpu: 0.0.40
codegen_flags: <defaults>
</compile_context>

<pallas_src>
import functools

import jax
import jax.numpy as jnp
from jax.experimental import pallas as pl
from jax.experimental.pallas import tpu as pltpu

ALPHA = 0.05
N_CLASS = 4
MAX_TILE = 32768  # pixels per grid step on the lane axis (multiple of 128)


def _choose_tile(hw: int) -> int:
    if hw >= 128:
        return min(MAX_TILE, (hw // 128) * 128)  # multiple of 128, <= hw
    return hw  # full extent (last-dim == array dim is always legal)


def _make_kernel(alpha: float, n_class: int, hw: int, n_pixels: int, tile: int):
    smooth_c = alpha / n_class
    inv_np = 1.0 / n_pixels

    def kernel(logits_ref, target_ref, out_ref, acc_ref):
        j = pl.program_id(1)

        @pl.when(j == 0)
        def _():
            acc_ref[...] = jnp.zeros_like(acc_ref)

        x = logits_ref[...].astype(jnp.float32)  # (C, T) — upcast in VMEM
        t = target_ref[...].astype(jnp.int32)    # (1, T)

        # Columns past H*W in the ragged last block are invalid: sanitize the
        # (possibly garbage) logits so exp/log stay finite, and mask the loss.
        col = j * tile + jax.lax.broadcasted_iota(jnp.int32, (1, tile), 1)
        valid = col < hw                          # (1, T) bool
        x = jnp.where(valid, x, 0.0)

        # log-softmax pieces over the class (sublane) axis.
        m = jnp.max(x, axis=0, keepdims=True)     # (1, T)
        z = x - m                                  # (C, T)
        lse = jnp.log(jnp.sum(jnp.exp(z), axis=0, keepdims=True))  # (1, T)

        # Smoothed target: one_hot*(1 - alpha*m2) + (alpha/C)*m2, m2 = (t==2).
        c_idx = jax.lax.broadcasted_iota(jnp.int32, x.shape, 0)     # (C, T)
        one_hot = (c_idx == t).astype(jnp.float32)                  # (C, T)
        m2 = (t == 2).astype(jnp.float32)                           # (1, T)
        smoothed = one_hot * (1.0 - alpha * m2) + smooth_c * m2     # (C, T)

        # sum_c smoothed == 1 for valid pixels, so
        #   per-pixel loss = -sum_c smoothed*(z - lse) = lse - sum_c smoothed*z
        dot = jnp.sum(smoothed * z, axis=0, keepdims=True)          # (1, T)
        pix_loss = jnp.where(valid, lse - dot, 0.0)                 # (1, T)

        acc_ref[...] += pix_loss  # lane-shaped accumulator, no per-step lane reduce

        @pl.when(j == pl.num_programs(1) - 1)
        def _():
            # One cross-lane reduction per batch element, scaled by 1/P.
            out_ref[...] = jnp.sum(acc_ref[...], keepdims=True) * jnp.float32(inv_np)

    return kernel


@functools.partial(jax.jit, static_argnames=("alpha", "n_class"))
def label_smoothing_ce_loss(logits, target, *, alpha=ALPHA, n_class=N_CLASS):
    N, C, H, W = logits.shape
    assert C == n_class
    if target.ndim == logits.ndim:          # PyTorch forward allows (N,1,H,W)
        target = jnp.squeeze(target, axis=1)

    HW = H * W
    P = N * HW

    # Free reshapes (NCHW already has (C, H*W) contiguous per sample):
    # no transpose, no pad, no dtype-cast pass over HBM.
    x = logits.reshape(N, C, HW)
    t = target.reshape(N, 1, HW)
    if t.dtype != jnp.int32:
        t = t.astype(jnp.int32)

    tile = _choose_tile(HW)
    num_j = pl.cdiv(HW, tile)

    kernel = _make_kernel(float(alpha), int(n_class), HW, P, tile)

    partials = pl.pallas_call(
        kernel,
        out_shape=jax.ShapeDtypeStruct((N, 1, 1), jnp.float32),
        grid_spec=pltpu.PrefetchScalarGridSpec(
            num_scalar_prefetch=0,
            grid=(N, num_j),
            in_specs=[
                pl.BlockSpec((None, C, tile), lambda n, j: (n, 0, j)),  # logits
                pl.BlockSpec((None, 1, tile), lambda n, j: (n, 0, j)),  # target
            ],
            out_specs=pl.BlockSpec((None, 1, 1), lambda n, j: (n, 0, 0)),
            scratch_shapes=[pltpu.VMEM((1, tile), jnp.float32)],  # running lane sum
        ),
        compiler_params=pltpu.CompilerParams(
            dimension_semantics=("parallel", "arbitrary"),  # batch ∥, pixel reduce
        ),
    )(x, t)

    return jnp.sum(partials)


def _reference_loss(logits, target, alpha=ALPHA, n_class=N_CLASS):
    """Pure-JAX transcription of the PyTorch forward (for verification)."""
    lp = jax.nn.log_softmax(logits.astype(jnp.float32), axis=1)
    one_hot = jax.nn.one_hot(target, n_class, axis=1, dtype=jnp.float32)
    mask = (target == 2).astype(jnp.float32)[:, None, :, :]
    smoothed = (one_hot * (1.0 - alpha) + (1.0 / n_class) * alpha) * mask \
             + one_hot * (1.0 - mask)
    return jnp.mean(-jnp.sum(smoothed * lp, axis=1))


if __name__ == "__main__":
    key = jax.random.PRNGKey(0)
    k1, k2 = jax.random.split(key)

    N, C, H, W = 2, 4, 16, 16
    logits = jax.random.normal(k1, (N, C, H, W), dtype=jnp.float32)
    target = jax.random.randint(k2, (N, H, W), 0, C, dtype=jnp.int32)

    loss = label_smoothing_ce_loss(logits, target)
    loss = jax.block_until_ready(loss)

    ref = _reference_loss(logits, target)
    assert abs(float(loss) - float(ref)) < 1e-4, (float(loss), float(ref))

    print("KERNEL_OK")
</pallas_src>

<mosaic_0001>
module attributes {stable_mosaic.version = 11 : i64} {
  func.func @kernel(%arg0: i32, %arg1: i32, %arg2: memref<1x4x256xf32, #tpu.memory_space<vmem>>, %arg3: memref<1x1x256xi32, #tpu.memory_space<vmem>>, %arg4: memref<1x1x1xf32, #tpu.memory_space<vmem>>, %arg5: memref<1x256xf32, #tpu.memory_space<vmem>>) attributes {dimension_semantics = [#tpu.dimension_semantics<parallel>, #tpu.dimension_semantics<arbitrary>], iteration_bounds = array<i64: 2, 1>, scalar_prefetch = 0 : i64, scratch_operands = 1 : i64, tpu.core_type = #tpu.core_type<tc>, window_params = [{transform_indices = @transform_0, window_bounds = array<i64: 1, 4, 256>}, {transform_indices = @transform_1, window_bounds = array<i64: 1, 1, 256>}, {transform_indices = @transform_2, window_bounds = array<i64: 1, 1, 1>}]} {
    %c0_i32 = arith.constant 0 : i32
    %0 = arith.cmpi eq, %arg1, %c0_i32 : i32
    %1 = arith.extui %0 : i1 to i32
    %c0_i32_0 = arith.constant 0 : i32
    %2 = arith.cmpi ne, %1, %c0_i32_0 : i32
    scf.if %2 {
      %cst_20 = arith.constant 0.000000e+00 : f32
      %56 = vector.broadcast %cst_20 : f32 to vector<1x256xf32>
      %c0_21 = arith.constant 0 : index
      %c0_22 = arith.constant 0 : index
      %57 = vector.load %arg5[%c0_21, %c0_22] : memref<1x256xf32, #tpu.memory_space<vmem>>, vector<1x256xf32>
      tpu.vector_store %arg5[%c0_21, %c0_22], %56 {strides = array<i32>} : memref<1x256xf32, #tpu.memory_space<vmem>>, vector<1x256xf32>,
    } else {
    }
    %c0 = arith.constant 0 : index
    %c0_1 = arith.constant 0 : index
    %c0_2 = arith.constant 0 : index
    %3 = vector.load %arg2[%c0, %c0_1, %c0_2] : memref<1x4x256xf32, #tpu.memory_space<vmem>>, vector<1x4x256xf32>
    %4 = vector.shape_cast %3 : vector<1x4x256xf32> to vector<4x256xf32>
    %c0_3 = arith.constant 0 : index
    %c0_4 = arith.constant 0 : index
    %c0_5 = arith.constant 0 : index
    %5 = vector.load %arg3[%c0_3, %c0_4, %c0_5] : memref<1x1x256xi32, #tpu.memory_space<vmem>>, vector<1x1x256xi32>
    %6 = vector.shape_cast %5 : vector<1x1x256xi32> to vector<1x256xi32>
    %c256_i32 = arith.constant 256 : i32
    %7 = arith.muli %arg1, %c256_i32 : i32
    %8 = tpu.iota {dimensions = array<i32: 1>} : vector<1x256xi32>
    %9 = vector.broadcast %7 : i32 to vector<1x256xi32>
    %10 = arith.addi %9, %8 : vector<1x256xi32>
    %c256_i32_6 = arith.constant 256 : i32
    %11 = vector.broadcast %c256_i32_6 : i32 to vector<1x256xi32>
    %12 = arith.cmpi slt, %10, %11 : vector<1x256xi32>
    %cst = arith.constant 0.000000e+00 : f32
    %13 = vector.shape_cast %12 : vector<1x256xi1> to vector<1x256xi1>
    %14 = vector.broadcast %13 : vector<1x256xi1> to vector<4x256xi1>
    %15 = vector.broadcast %cst : f32 to vector<4x256xf32>
    %16 = arith.select %14, %4, %15 : vector<4x256xi1>, vector<4x256xf32>
    %cst_7 = arith.constant dense<0xFF800000> : vector<256xf32>
    %17 = vector.multi_reduction <maximumf>, %16, %cst_7 [0] : vector<4x256xf32> to vector<256xf32>
    %18 = vector.shape_cast %17 : vector<256xf32> to vector<1x256xf32>
    %19 = vector.broadcast %18 : vector<1x256xf32> to vector<4x256xf32>
    %20 = arith.subf %16, %19 : vector<4x256xf32>
    %21 = math.exp %20 : vector<4x256xf32>
    %cst_8 = arith.constant dense<0.000000e+00> : vector<256xf32>
    %22 = vector.multi_reduction <add>, %21, %cst_8 [0] : vector<4x256xf32> to vector<256xf32>
    %23 = vector.shape_cast %22 : vector<256xf32> to vector<1x256xf32>
    %24 = math.log %23 : vector<1x256xf32>
    %25 = tpu.iota {dimensions = array<i32: 0>} : vector<4x256xi32>
    %26 = vector.broadcast %6 : vector<1x256xi32> to vector<4x256xi32>
    %27 = arith.cmpi eq, %25, %26 : vector<4x256xi32>
    %28 = arith.extui %27 : vector<4x256xi1> to vector<4x256xi32>
    %29 = arith.sitofp %28 : vector<4x256xi32> to vector<4x256xf32>
    %c2_i32 = arith.constant 2 : i32
    %30 = vector.broadcast %c2_i32 : i32 to vector<1x256xi32>
    %31 = arith.cmpi eq, %6, %30 : vector<1x256xi32>
    %32 = arith.extui %31 : vector<1x256xi1> to vector<1x256xi32>
    %33 = arith.sitofp %32 : vector<1x256xi32> to vector<1x256xf32>
    %cst_9 = arith.constant 5.000000e-02 : f32
    %34 = vector.broadcast %cst_9 : f32 to vector<1x256xf32>
    %35 = arith.mulf %34, %33 : vector<1x256xf32>
    %cst_10 = arith.constant 1.000000e+00 : f32
    %36 = vector.broadcast %cst_10 : f32 to vector<1x256xf32>
    %37 = arith.subf %36, %35 : vector<1x256xf32>
    %38 = vector.broadcast %37 : vector<1x256xf32> to vector<4x256xf32>
    %39 = arith.mulf %29, %38 : vector<4x256xf32>
    %cst_11 = arith.constant 1.250000e-02 : f32
    %40 = vector.broadcast %cst_11 : f32 to vector<1x256xf32>
    %41 = arith.mulf %40, %33 : vector<1x256xf32>
    %42 = vector.broadcast %41 : vector<1x256xf32> to vector<4x256xf32>
    %43 = arith.addf %39, %42 : vector<4x256xf32>
    %44 = arith.mulf %43, %20 : vector<4x256xf32>
    %cst_12 = arith.constant dense<0.000000e+00> : vector<256xf32>
    %45 = vector.multi_reduction <add>, %44, %cst_12 [0] : vector<4x256xf32> to vector<256xf32>
    %46 = vector.shape_cast %45 : vector<256xf32> to vector<1x256xf32>
    %47 = arith.subf %24, %46 : vector<1x256xf32>
    %cst_13 = arith.constant 0.000000e+00 : f32
    %48 = vector.broadcast %cst_13 : f32 to vector<1x256xf32>
    %49 = arith.select %12, %47, %48 : vector<1x256xi1>, vector<1x256xf32>
    %c0_14 = arith.constant 0 : index
    %c0_15 = arith.constant 0 : index
    %50 = vector.load %arg5[%c0_14, %c0_15] : memref<1x256xf32, #tpu.memory_space<vmem>>, vector<1x256xf32>
    %51 = arith.addf %50, %49 : vector<1x256xf32>
    %c0_16 = arith.constant 0 : index
    %c0_17 = arith.constant 0 : index
    %52 = vector.load %arg5[%c0_16, %c0_17] : memref<1x256xf32, #tpu.memory_space<vmem>>, vector<1x256xf32>
    tpu.vector_store %arg5[%c0_16, %c0_17], %51 {strides = array<i32>} : memref<1x256xf32, #tpu.memory_space<vmem>>, vector<1x256xf32>,
    %c0_i32_18 = arith.constant 0 : i32
    %53 = arith.cmpi eq, %arg1, %c0_i32_18 : i32
    %54 = arith.extui %53 : i1 to i32
    %c0_i32_19 = arith.constant 0 : i32
    %55 = arith.cmpi ne, %54, %c0_i32_19 : i32
    scf.if %55 {
      %c0_20 = arith.constant 0 : index
      %c0_21 = arith.constant 0 : index
      %56 = vector.load %arg5[%c0_20, %c0_21] : memref<1x256xf32, #tpu.memory_space<vmem>>, vector<1x256xf32>
      %57 = vector.shape_cast %56 : vector<1x256xf32> to vector<1x1x256xf32>
      %cst_22 = arith.constant dense<0.000000e+00> : vector<1xf32>
      %58 = vector.multi_reduction <add>, %57, %cst_22 [1, 2] : vector<1x1x256xf32> to vector<1xf32>
      %59 = vector.shape_cast %58 : vector<1xf32> to vector<1x1x1xf32>
      %60 = vector.extract %59[0, 0, 0] : f32 from vector<1x1x1xf32>
      %61 = vector.broadcast %60 : f32 to vector<1x1xf32>
      %cst_23 = arith.constant 0.001953125 : f32
      %62 = vector.broadcast %cst_23 : f32 to vector<1x1xf32>
      %63 = arith.mulf %61, %62 : vector<1x1xf32>
      %c0_24 = arith.constant 0 : index
      %c0_25 = arith.constant 0 : index
      %c0_26 = arith.constant 0 : index
      %64 = vector.load %arg4[%c0_24, %c0_25, %c0_26] : memref<1x1x1xf32, #tpu.memory_space<vmem>>, vector<1x1x1xf32>
      %65 = vector.shape_cast %64 : vector<1x1x1xf32> to vector<1x1xf32>
      %66 = vector.shape_cast %63 : vector<1x1xf32> to vector<1x1x1xf32>
      tpu.vector_store %arg4[%c0_24, %c0_25, %c0_26], %66 {strides = array<i32>} : memref<1x1x1xf32, #tpu.memory_space<vmem>>, vector<1x1x1xf32>,
    } else {
    }
    return
  }
  func.func @transform_0(%arg0: i32, %arg1: i32) -> (i32, i32, i32) {
    %c0_i32 = arith.constant 0 : i32
    %c0_i32_0 = arith.constant 0 : i32
    return %arg0, %c0_i32, %arg1 : i32, i32, i32
  }
  func.func @transform_1(%arg0: i32, %arg1: i32) -> (i32, i32, i32) {
    %c0_i32 = arith.constant 0 : i32
    %c0_i32_0 = arith.constant 0 : i32
    return %arg0, %c0_i32, %arg1 : i32, i32, i32
  }
  func.func @transform_2(%arg0: i32, %arg1: i32) -> (i32, i32, i32) {
    %c0_i32 = arith.constant 0 : i32
    %c0_i32_0 = arith.constant 0 : i32
    %c0_i32_1 = arith.constant 0 : i32
    return %arg0, %c0_i32, %c0_i32_0 : i32, i32, i32
  }
}

</mosaic_0001>

<bundles_post_ra>
// kernel: label_smoothing_ce_loss.1
= control target key start
LH: loop header
LB: loop body
LE: loop exit
PB: predicated region body
PF: predicated region fallthrough
CT: control target
= control target key end

     0   :  { %s562_s9 = smov 0   ;;  %s564_s10 = smov 0   ;;  %s636_s0 = inlined_call_operand.vmem [shape: f32[2,4,256], index: 0, kind: input, shape index: {}]   ;;  %s637_s1 = inlined_call_operand.vmem [shape: s32[2,1,256], index: 1, kind: input, shape index: {}]   ;;  %s638_s2 = inlined_call_operand.vmem [shape: f32[2,1,1], index: 2, kind: output, shape index: {}]  }
   0x1   :  { %s566_s11 = smov 0  }
   0x2 LB: > { %s24_s12 = sadd.s32 1, %s539_s10  ;;  %p474_p0 = scmp.ge.s32.totalorder %s543_s11, 1  ;;  %s543_s11 = sphi %s566_s11, %s12_s11   ;;  %s539_s10 = sphi %s564_s10, %s642_s10   ;;  %s535_s9 = sphi %s562_s9, %s641_s9  }
   0x3   : > { %p26_p1 = scmp.ge.s32.totalorder %s24_s12, 2  ;;  %p147_p2 = scmp.lt.s32.totalorder %s543_s11, 3 }
   0x5   : > { %s644_s12 = smov (%p26_p1, %s24_s12), 0  ;;  %p148_p3 = pnand %p474_p0, %p147_p2 }
   0x6   : > { %p180_p4 = scmp.lt.s32.totalorder (!%p148_p3), %s535_s9, 1  ;;  %v205_v0 = vlaneseq (!%p148_p3)  ;;  %v545_v2 = vmov (!%p148_p3), 0.0   ;;  %vm230_vm1 = vcmask (!%p148_p3), 1043456   ;;  %vm377_vm5 = vcmask (!%p148_p3), 1040384  }
   0x7   : > { %151 = sbr.rel (%p148_p3) target bundleno = 305 (0x131), region = 28  ;;  %vm392_vm6 = vcmask (!%p148_p3), 0  }
   0x8   : > { %vm582_vm0 = vcmp.lt.s32.totalorder (!%p148_p3), %v205_v0, 256  ;;  %v590_v3 = vshrl.u32 (!%p148_p3), %v205_v0, 7 }
   0x9   : > { %209 = vst.msk [vmem:[#allocation2] sm:$0x3] (!%p148_p3), %vm582_vm0, %v545_v2 }
   0xa   : > { %v600_v9 = vsub.s32 (!%p148_p3), 0, %v590_v3  ;;  %v604_v11 = vsub.s32 (!%p148_p3), 1, %v590_v3 }
   0xe   : > { %s646_s9 = smov (!%p180_p4, %s535_s9), 1 }
   0xf   : > { %s483_s13 = sshll.u32 %s646_s9, 3  ;;  %s477_s14 = sshll.u32 %s646_s9, 1 }
  0x10   : > { %s187_s17 = scalar_lea.vmem %s636_s0, %s483_s13  ;;  %s196_s20 = scalar_lea.vmem %s637_s1, %s477_s14 }
  0x11   : > { %v210_v4 = vld [vmem:[%s187_s17] sm:$0xff]  ;;  %s200_s24 = scalar_lea.vmem %s638_s2, %s646_s9 }
  0x12   : > { %v211_v5 = vld [vmem:[%s196_s20] sm:$0x3]  ;;  %v226_v6 = vcombine.high %v210_v4, %v210_v4  ;;  %v231_v7 = vsel %vm230_vm1, %v210_v4, -inf }
  0x13   : > { %v232_v8 = vrot.slane %v231_v7, 4  ;;  %vm285_vm2 = vcmp.eq.s32.totalorder %v211_v5, 2  ;;  %v274_v18 = vrot.slane %v211_v5, %v600_v9  ;;  %v278_v19 = vrot.slane %v211_v5, %v604_v11 }
  0x14   : > { %v238_v10 = vsel %vm230_vm1, %v226_v6, -inf  ;;  %v480_v12 = vsel %vm285_vm2, 1.0, %v545_v2 }
  0x15   : > { %v233_v13 = vmax.f32 %v231_v7, %v232_v8  ;;  %v239_v14 = vrot.slane %v238_v10, 4  ;;  %v288_v15 = vmul.f32 0.05, %v480_v12  ;;  %vm279_vm3 = vcmp.eq.s32.totalorder %v590_v3, %v274_v18 }
  0x16   : > { %vm280_vm4 = vcmp.eq.s32.totalorder %v590_v3, %v278_v19  ;;  %v303_v28 = vmul.f32 0.0125, %v480_v12  ;;  %v478_v29 = vsel %vm279_vm3, 1.0, %v545_v2 }
  0x17   : > { %v234_v16 = vrot.slane %v233_v13, 2  ;;  %v240_v17 = vmax.f32 %v238_v10, %v239_v14  ;;  %v289_v22 = vsub.f32 1.0, %v288_v15  ;;  %v479_v33 = vsel %vm280_vm4, 1.0, %v545_v2 }
  0x18   : > { %v308_v37 = vrot.slane %v303_v28, %v600_v9  ;;  %v312_v40 = vrot.slane %v303_v28, %v604_v11 }
  0x19   : > { %v235_v20 = vmax.f32 %v233_v13, %v234_v16  ;;  %v241_v21 = vrot.slane %v240_v17, 2  ;;  %v294_v27 = vrot.slane %v289_v22, %v600_v9  ;;  %v298_v32 = vrot.slane %v289_v22, %v604_v11 }
  0x1a   : > { %v546_v13 = vmov 1966171168  }
  0x1b   : > { %v236_v23 = vrot.slane %v235_v20, 1  ;;  %v242_v24 = vmax.f32 %v240_v17, %v241_v21  ;;  %v301_v36 = vmul.f32 %v478_v29, %v294_v27  ;;  %v302_v39 = vmul.f32 %v479_v33, %v298_v32  ;;  %v337_v27 = vld [vmem:[#allocation2] sm:$0x3] }
  0x1c   : > { %v342_v14 = vunpack.c.l.s4 %v546_v13 }
  0x1d   : > { %v237_v25 = vmax.f32 %v235_v20, %v236_v23  ;;  %v243_v26 = vrot.slane %v242_v24, 1  ;;  %v315_v41 = vadd.f32 %v308_v37, %v301_v36  ;;  %v316_v42 = vadd.f32 %v312_v40, %v302_v39 }
  0x1e   : > { %v343_v19 = vunpack.c.0.s8 %v342_v14 }
  0x1f   : > { %v244_v30 = vmax.f32 %v242_v24, %v243_v26  ;;  %v245_v31 = vsub.f32 %v210_v4, %v237_v25 }
  0x20   : > { %v346_v24 = vsub.s32 %v343_v19, %v590_v3 }
  0x21   : > { %v246_v34 = vsub.f32 %v226_v6, %v244_v30  ;;  %v247_v35 = vmul.f32 1.442695, %v245_v31  ;;  %v317_v43 = vmul.f32 %v315_v41, %v245_v31 }
  0x23   : > { %513 = vpow2.f32 %v247_v35  ;;  %v249_v38 = vmul.f32 1.442695, %v246_v34  ;;  %v318_v44 = vmul.f32 %v316_v42, %v246_v34  ;;  %v319_v46 = vsel %vm230_vm1, %v317_v43, 0.0 }
  0x24   : > { %v320_v52 = vrot.slane %v319_v46, 4 }
  0x25   : > { %515 = vpow2.f32 %v249_v38  ;;  %v326_v50 = vsel %vm230_vm1, %v318_v44, 0.0 }
  0x26   : > { %v327_v55 = vrot.slane %v326_v50, 4  ;;  %v321_v58 = vadd.f32 %v320_v52, %v319_v46 }
  0x28   : > { %v328_v61 = vadd.f32 %v327_v55, %v326_v50  ;;  %v322_v0 = vrot.slane %v321_v58, 2 }
  0x2a   : > { %v329_v5 = vrot.slane %v328_v61, 2  ;;  %v323_v7 = vadd.f32 %v322_v0, %v321_v58 }
  0x2c   : > { %v330_v8 = vadd.f32 %v329_v5, %v328_v61  ;;  %v324_v10 = vrot.slane %v323_v7, 1 }
  0x2d   : > { %v514_v45 = vpop.eup %513 }
  0x2e   : > { %v251_v47 = vsel %vm230_vm1, %v514_v45, 0.0  ;;  %v331_v12 = vrot.slane %v330_v8, 1  ;;  %v325_v15 = vadd.f32 %v324_v10, %v323_v7 }
  0x2f   : > { %v516_v48 = vpop.eup %515  ;;  %v252_v49 = vrot.slane %v251_v47, 4 }
  0x30   : > { %v258_v51 = vsel %vm230_vm1, %v516_v48, 0.0  ;;  %v332_v18 = vadd.f32 %v331_v12, %v330_v8 }
  0x31   : > { %v253_v53 = vadd.f32 %v252_v49, %v251_v47  ;;  %v259_v54 = vrot.slane %v258_v51, 4 }
  0x33   : > { %v254_v56 = vrot.slane %v253_v53, 2  ;;  %v260_v57 = vadd.f32 %v259_v54, %v258_v51 }
  0x35   : > { %v255_v59 = vadd.f32 %v254_v56, %v253_v53  ;;  %v261_v60 = vrot.slane %v260_v57, 2 }
  0x37   : > { %v256_v62 = vrot.slane %v255_v59, 1  ;;  %v262_v63 = vadd.f32 %v261_v60, %v260_v57 }
  0x39   : > { %v257_v2 = vadd.f32 %v256_v62, %v255_v59  ;;  %v263_v4 = vrot.slane %v262_v63, 1 }
  0x3b   : > { %v264_v6 = vadd.f32 %v263_v4, %v262_v63  ;;  %517 = vlog2.f32 %v257_v2 }
  0x3d   : > { %519 = vlog2.f32 %v264_v6 }
  0x45   : > { %v518_v16 = vpop.eup %517 }
  0x46   : > { %v266_v17 = vmul.f32 0.6931472, %v518_v16 }
  0x47   : > { %v520_v20 = vpop.eup %519 }
  0x48   : > { %v268_v21 = vmul.f32 0.6931472, %v520_v20  ;;  %v333_v22 = vsub.f32 %v266_v17, %v325_v15 }
  0x4a   : > { %v334_v23 = vsub.f32 %v268_v21, %v332_v18 }
  0x4c   : > { %v340_v25 = vcombine.low %v333_v22, %v334_v23 }
  0x4e   : > { %v347_v26 = vrot.slane %v340_v25, %v346_v24 }
  0x50   : > { %v354_v28 = vrot.slane %v347_v26, %v346_v24 }
  0x52   : > { %v356_v29 = vadd.f32 %v354_v28, %v337_v27 }
  0x54   : > { %361 = vst.msk [vmem:[#allocation2] sm:$0x3] %vm582_vm0, %v356_v29 }
  0x5b   : > { %v365_v30 = vld [vmem:[#allocation2] sm:$0x3] }
  0x5c   : > { %v370_v31 = vrot.slane %v365_v30, %v600_v9  ;;  %v374_v32 = vrot.slane %v365_v30, %v604_v11 }
  0x5e   : > { %v378_v33 = vsel %vm377_vm5, %v370_v31, 0.0  ;;  %v379_v34 = vsel %vm377_vm5, %v374_v32, 0.0 }
  0x5f   : > { %v380_v35 = vadd.f32 %v379_v34, %v378_v33 }
  0x61   : > { %381 = vadd.xlane.f32.xlu0 %v380_v35 }
  0xee   : > { %v382_v3 = vpop.xlane.xlu0 %381 }
  0xef   : > { %v383_v36 = vrot.slane %v382_v3, 4 }
  0xf1   : > { %v384_v37 = vadd.f32 %v383_v36, %v382_v3 }
  0xf3   : > { %v385_v38 = vrot.slane %v384_v37, 2 }
  0xf5   : > { %v386_v39 = vadd.f32 %v385_v38, %v384_v37 }
  0xf7   : > { %v387_v40 = vrot.slane %v386_v39, 1 }
  0xf9   : > { %v388_v41 = vadd.f32 %v387_v40, %v386_v39 }
  0xfb   : > { %484 = vpush %v388_v41 }
 0x12c   : > { %s485_s21 = spop %484 }
 0x12d   : > { %v390_v1 = vstv %s485_s21 }
 0x12e   : > { %v391_v9 = vmul.f32 0.001953125, %v390_v1 }
 0x130   : > { %393 = vst.msk [vmem:[%s200_s24] sm:$0x1] %vm392_vm6, %v391_v9 }
 0x131 PF: > { %s12_s11 = sadd.s32 1, %s543_s11   ;;  %s641_s9 = smov %s539_s10 }
 0x132   : > { %p9_p5 = scmp.ge.s32.totalorder %s12_s11, 4   ;;  %s642_s10 = smov %s644_s12 }
 0x134   :  { %11 = sbr.rel (!%p9_p5) target bundleno = 2 (0x2), region = 69 }

</bundles_post_ra>
